<compile_context>
chip_gen: v6e
topology: v6e:2x2x1
jax: 0.10.0
libtpu: 0.0.40
codegen_flags: <defaults>
</compile_context>

<pallas_src>
import functools

import numpy as np
import jax
import jax.numpy as jnp
from jax import lax
from jax.experimental import pallas as pl
from jax.experimental.pallas import tpu as pltpu


# 3x3 border walked clockwise from the top-left corner, and the Sobel Gy
# values on that ring.  Note ring[p + 4] == -ring[p] (180-deg antisymmetry)
# and every compass mask is a cyclic shift of this ring with a zero center.
_RING_IDX = ((0, 0), (0, 1), (0, 2), (1, 2), (2, 2), (2, 1), (2, 0), (1, 0))
_RING_BASE = np.array([1.0, 2.0, 1.0, 0.0, -1.0, -2.0, -1.0, 0.0])


# ---------------------------------------------------------------------------
# Deterministic EHD mask generation (mirrors EHD_Layer.Generate_masks for
# mask_size=3).
# ---------------------------------------------------------------------------
def generate_masks(mask_size=3, angle_res=45, normalize=False):
    """Rotations move the 3x3 border one slot per 45 degrees: exact for
    multiples of 90 deg, classical compass masks for the diagonals.
    # TODO(synk): scipy.ndimage.rotate uses cubic-spline interpolation for the
    # diagonal angles; without scipy the compass-ring rotation is used, so the
    # diagonal-orientation masks differ slightly from the PyTorch module's.
    """
    assert mask_size == 3, "only mask_size=3 supported in this synthetic setup"
    angles = np.arange(0, 360, angle_res)
    masks = np.zeros((len(angles), mask_size, mask_size), dtype=np.float64)
    for r, ang in enumerate(angles):
        shift = int(round(ang / 45.0)) % 8
        for p, (i, j) in enumerate(_RING_IDX):
            masks[r, i, j] = _RING_BASE[(p + shift) % 8]
    if normalize:
        masks = masks / 8.0          # mask_size == 3 branch of the PyTorch code
    return masks.astype(np.float32)


# ---------------------------------------------------------------------------
# Compile-time mask analysis.
# ---------------------------------------------------------------------------
def _build_plan(base_masks, dilation, W):
    """Analyse the per-orientation masks (shared across channels).

    Returns a dict:
      mode == "ring": masks are cyclic shifts of the Sobel compass ring (true
        for generate_masks output).  All responses come from pair-sum CSE:
          S_j = r_j + r_{j+1},  T_j = S_j + S_{j+1},  D_j = T_j - T_{j+4},
          response(shift s) = scale * D_{(-s) % 8},   D_{j+4} = -D_j.
      mode == "generic": per-orientation float tap lists, with 180-degree
        antisymmetric orientations (mask_b == -mask_a) sharing one
        accumulator plus a sign.
    """
    m = np.asarray(base_masks, dtype=np.float64)
    A, K, _ = m.shape

    nz = np.abs(m[m != 0.0])
    scale = float(nz.min()) if nz.size else 1.0   # e.g. 1/8 when normalized
    mi = m / scale

    # --- ring detection (gates the pair-sum + |D| shortcuts) ---
    if K == 3:
        orient_j, ring_ok = [], True
        for a in range(A):
            if abs(mi[a, 1, 1]) > 1e-6:
                ring_ok = False
                break
            ring_a = np.array([mi[a, i, j] for (i, j) in _RING_IDX])
            s_match = None
            for s in range(8):
                if np.allclose(ring_a, np.roll(_RING_BASE, -s), atol=1e-6):
                    s_match = s
                    break
            if s_match is None:
                ring_ok = False
                break
            orient_j.append((-s_match) % 8)
        if ring_ok:
            ring_offsets = tuple(int(i * dilation * W + j * dilation)
                                 for (i, j) in _RING_IDX)
            return dict(mode="ring", ring_offsets=ring_offsets,
                        orient_j=tuple(orient_j), scale=scale)

    # --- generic fallback: float taps, 180-degree pairs share an accumulator ---
    groups, orient_group = [], [None] * A
    for a in range(A):
        if orient_group[a] is not None:
            continue
        taps = tuple((int(ki * dilation * W + kj * dilation), float(m[a, ki, kj]))
                     for ki in range(K) for kj in range(K)
                     if m[a, ki, kj] != 0.0)      # zero-tap skip
        gi = len(groups)
        groups.append(taps)
        orient_group[a] = (gi, 1.0)
        for b in range(a + 1, A):
            if orient_group[b] is None and np.allclose(m[b], -m[a], atol=1e-12):
                orient_group[b] = (gi, -1.0)
    return dict(mode="generic", groups=tuple(groups),
                orient_group=tuple(orient_group), scale=1.0)


# ---------------------------------------------------------------------------
# Tile selection (images per grid block) + explicit VMEM limit.
# ---------------------------------------------------------------------------
def _pick_tiles(N, C, HW, A, agg_max):
    """Keep ~<=20 slab-sized f32 temporaries (rolls + pair/window sums + D's +
    running max) plus double-buffered I/O under a budget that is safe for
    v7x's 64 MiB physical VMEM (and well inside v5e/v6e's 128 MiB).  Prefer
    8-image-aligned blocks so every BlockSpec keeps (8,128)-friendly sublane
    extents, and >=2 blocks when there is enough work for both v7x cores.
    # TODO(synk): derive the budget per generation via pltpu.get_tpu_info().
    """
    slab_b = C * HW * 4                               # one image's rows (f32)
    out_b = (HW * 4) if agg_max else (C * A * HW * 4)
    per_img = 20 * slab_b + 2 * (slab_b + out_b)      # live temps + 2x-buffered I/O
    budget = 24 << 20
    target = max(1, (4 << 20) // slab_b)              # a few us of work per step
    nb = max(1, min(N, target, budget // max(per_img, 1)))
    if N >= 2:
        nb = min(nb, max(1, N // 2))                  # >=2 blocks when splittable
    if nb < N and nb % 8 != 0:
        if nb >= 8:
            nb = (nb // 8) * 8                        # 8-image-aligned blocks
        elif N * per_img <= budget:
            nb = N                                    # tiny problem: one block
        # else: keep the small block (sublane dim gets padded).
    while N % nb:
        nb -= 1                                       # uniform blocks
    vmem_limit = int(min(max(2 * nb * per_img, 32 << 20), 48 << 20))
    return nb, vmem_limit


# ---------------------------------------------------------------------------
# Pallas kernel
# ---------------------------------------------------------------------------
def _ehd_kernel(x_ref, out_ref, *, plan, nb, C, HW, A, agg_max):
    # x_ref: (nb*C, HW) f32 slab; rows ordered (image, channel); spatial plane
    # flattened lane-dense into the last axis.  Every stencil tap is a static
    # lane roll of the same slab (XLU slot) shared by ALL channels and
    # orientations; roll wrap-around only pollutes output positions that the
    # wrapper slices away.
    slab = x_ref[...]
    scale = plan["scale"]

    rolled = {}

    def r(off):                               # one roll per distinct tap offset
        if off not in rolled:
            rolled[off] = slab if off == 0 else pltpu.roll(
                slab, shift=(HW - off) % HW, axis=1)
        return rolled[off]

    if plan["mode"] == "ring":
        # Pair-sum CSE over the compass ring (~20 VPU ops for all orientations).
        ring_off = plan["ring_offsets"]
        S, T, D = {}, {}, {}

        def s_(j):                            # S_j = r_j + r_{j+1}
            if j not in S:
                S[j] = r(ring_off[j]) + r(ring_off[(j + 1) % 8])
            return S[j]

        def t_(j):                            # T_j = S_j + S_{j+1}
            if j not in T:
                T[j] = s_(j) + s_((j + 1) % 8)
            return T[j]

        def d_(jc):                           # D_jc = T_jc - T_{jc+4}; D_{jc+4}=-D_jc
            if jc not in D:
                D[jc] = t_(jc) - t_(jc + 4)
            return D[jc]

        canon_val = d_
        keyed = [(j % 4, 1.0 if j < 4 else -1.0) for j in plan["orient_j"]]
    else:
        # Generic fallback: float taps; 180-deg pairs share an accumulator.
        groups = plan["groups"]
        accs = {}

        def group_acc(gi):
            if gi not in accs:
                acc = None
                for off, w in groups[gi]:
                    term = r(off) * w
                    acc = term if acc is None else acc + term
                accs[gi] = jnp.zeros_like(slab) if acc is None else acc
            return accs[gi]

        canon_val = group_acc
        keyed = list(plan["orient_group"])

    if agg_max:
        # Orientation max: a 180-deg antisymmetric pair collapses to |.|;
        # unpaired orientations keep their sign (gating for arbitrary angle
        # sets not closed under 180-deg rotation).
        signs = {}
        for k, sg in keyed:
            signs.setdefault(k, set()).add(sg)
        best = None
        for k in sorted(signs):
            v = canon_val(k)
            sg = signs[k]
            contrib = jnp.abs(v) if len(sg) == 2 else (v if 1.0 in sg else -v)
            best = contrib if best is None else jnp.maximum(best, contrib)
        # Channel max: one sublane-group reduce + one full-block store.
        red = jnp.max(best.reshape(nb, C, HW), axis=1)        # (nb, HW)
        if scale != 1.0:
            red = red * scale        # single positive scale; commutes with max/abs
        out_ref[...] = red
    else:
        # Responses emitted already in the module's channel order c*A + a:
        # lane block a of row (n, c).  Slice starts are multiples of HW, so
        # for HW % 128 == 0 these are unmasked lane-dense stores.
        for a in range(A):
            k, sg = keyed[a]
            v = canon_val(k)
            f = sg * scale
            out_ref[:, a * HW:(a + 1) * HW] = v if f == 1.0 else v * f


# ---------------------------------------------------------------------------
# Forward wrapper
# ---------------------------------------------------------------------------
def ehd_forward(x, base_masks, *, dilation=1, aggregation_type="max"):
    N, C, H, W = x.shape
    A, K, _ = base_masks.shape
    Ho = H - dilation * (K - 1)
    Wo = W - dilation * (K - 1)
    assert Ho >= 1 and Wo >= 1, "input too small for kernel size / dilation"
    HW = H * W
    # TODO(synk): for W >= 128 switch to an (N*C*H, W) layout (vertical taps
    # become row offsets, only 2 lane rolls) and pad lanes if H*W % 128 != 0.

    plan = _build_plan(base_masks, dilation, W)
    agg_max = aggregation_type == "max"
    nb, vmem_limit = _pick_tiles(N, C, HW, A, agg_max)
    grid = (N // nb,)

    # TODO(synk): optionally stream the input (and the 'none'-path output) in
    # bf16 on v6e/v7x to halve HBM bytes; keep f32 on v5e (no bf16 VPU there).
    x2 = x.astype(jnp.float32).reshape(N * C, HW)

    kern = functools.partial(_ehd_kernel, plan=plan, nb=nb, C=C, HW=HW, A=A,
                             agg_max=agg_max)

    if agg_max:
        out_shape = jax.ShapeDtypeStruct((N, HW), jnp.float32)
        out_spec = pl.BlockSpec((nb, HW), lambda i: (i, 0))
    else:
        out_shape = jax.ShapeDtypeStruct((N * C, A * HW), jnp.float32)
        out_spec = pl.BlockSpec((nb * C, A * HW), lambda i: (i, 0))

    out = pl.pallas_call(
        kern,
        out_shape=out_shape,
        grid=grid,
        in_specs=[pl.BlockSpec((nb * C, HW), lambda i: (i, 0))],
        out_specs=out_spec,
        compiler_params=pltpu.CompilerParams(
            dimension_semantics=("parallel",),
            vmem_limit_bytes=vmem_limit),
    )(x2)

    if agg_max:
        return out.reshape(N, 1, H, W)[:, :, :Ho, :Wo]
    # (N*C, A*HW) is already in the grouped-conv channel order oc = c*A + a,
    # so this is a free reshape (no wrapper transpose / extra HBM pass).
    return out.reshape(N, C * A, H, W)[:, :, :Ho, :Wo]


class EHDLayer:
    """JAX/Pallas counterpart of the PyTorch EHD_Layer forward pass."""

    def __init__(self, in_channels, angle_res=45, normalize_kernel=True,
                 dilation=1, aggregation_type="max", kernel_size=3):
        self.in_channels = in_channels
        self.dilation = dilation
        self.aggregation_type = aggregation_type
        self.base_masks = generate_masks(kernel_size, angle_res, normalize_kernel)
        self.num_orientations = self.base_masks.shape[0]
        # Same buffer the torch module builds: (C*A, 1, K, K), masks[c*A+a] = base[a].
        self.masks = jnp.asarray(
            np.tile(self.base_masks[:, None, :, :], (in_channels, 1, 1, 1)))
        self._fwd = jax.jit(functools.partial(
            ehd_forward, base_masks=self.base_masks,
            dilation=dilation, aggregation_type=aggregation_type))

    def __call__(self, x):
        return self._fwd(x)


# ---------------------------------------------------------------------------
# Pure-JAX reference (grouped dilated conv + channel max), for verification.
# ---------------------------------------------------------------------------
def ehd_reference(x, masks, *, dilation, aggregation_type):
    C = x.shape[1]
    out = lax.conv_general_dilated(
        x, masks,
        window_strides=(1, 1), padding="VALID",
        rhs_dilation=(dilation, dilation),
        feature_group_count=C,
        dimension_numbers=("NCHW", "OIHW", "NCHW"),
    )
    if aggregation_type == "max":
        out = jnp.max(out, axis=1, keepdims=True)
    return out


if __name__ == "__main__":
    in_channels = 4
    angle_res = 45            # -> 8 orientations
    kernel_size = 3
    dilation = 1
    normalize_kernel = True

    layer_max = EHDLayer(in_channels, angle_res=angle_res,
                         normalize_kernel=normalize_kernel, dilation=dilation,
                         aggregation_type="max", kernel_size=kernel_size)
    layer_all = EHDLayer(in_channels, angle_res=angle_res,
                         normalize_kernel=normalize_kernel, dilation=dilation,
                         aggregation_type="none", kernel_size=kernel_size)

    key = jax.random.PRNGKey(0)
    x = jax.random.normal(key, (2, in_channels, 16, 16), dtype=jnp.float32)

    # 'max' aggregation path (module's default return).
    out = jax.block_until_ready(layer_max(x))
    ref = ehd_reference(x, layer_max.masks, dilation=dilation,
                        aggregation_type="max")
    assert out.shape == ref.shape == (2, 1, 14, 14), (out.shape, ref.shape)
    np.testing.assert_allclose(np.asarray(out), np.asarray(ref),
                               rtol=1e-4, atol=1e-4)

    # Non-'max' path (module returns the raw grouped-conv response maps).
    out_all = jax.block_until_ready(layer_all(x))
    ref_all = ehd_reference(x, layer_all.masks, dilation=dilation,
                            aggregation_type="none")
    assert out_all.shape == ref_all.shape == (2, in_channels * 8, 14, 14)
    np.testing.assert_allclose(np.asarray(out_all), np.asarray(ref_all),
                               rtol=1e-4, atol=1e-4)

    print("KERNEL_OK")
</pallas_src>

<mosaic_0001>
module attributes {stable_mosaic.version = 11 : i64} {
  func.func @_ehd_kernel(%arg0: i32, %arg1: memref<8x256xf32, #tpu.memory_space<vmem>>, %arg2: memref<2x256xf32, #tpu.memory_space<vmem>>) attributes {dimension_semantics = [#tpu.dimension_semantics<parallel>], iteration_bounds = array<i64: 1>, scalar_prefetch = 0 : i64, scratch_operands = 0 : i64, tpu.core_type = #tpu.core_type<tc>, window_params = [{transform_indices = @transform_0, window_bounds = array<i64: 8, 256>}, {transform_indices = @transform_1, window_bounds = array<i64: 2, 256>}]} {
    %c0 = arith.constant 0 : index
    %c0_0 = arith.constant 0 : index
    %0 = vector.load %arg1[%c0, %c0_0] : memref<8x256xf32, #tpu.memory_space<vmem>>, vector<8x256xf32>
    %c255_i32 = arith.constant 255 : i32
    %1 = tpu.dynamic_rotate %0 by %c255_i32 dim 1 : vector<8x256xf32>, i32 -> vector<8x256xf32>
    %2 = arith.addf %0, %1 : vector<8x256xf32>
    %c254_i32 = arith.constant 254 : i32
    %3 = tpu.dynamic_rotate %0 by %c254_i32 dim 1 : vector<8x256xf32>, i32 -> vector<8x256xf32>
    %4 = arith.addf %1, %3 : vector<8x256xf32>
    %5 = arith.addf %2, %4 : vector<8x256xf32>
    %c222_i32 = arith.constant 222 : i32
    %6 = tpu.dynamic_rotate %0 by %c222_i32 dim 1 : vector<8x256xf32>, i32 -> vector<8x256xf32>
    %c223_i32 = arith.constant 223 : i32
    %7 = tpu.dynamic_rotate %0 by %c223_i32 dim 1 : vector<8x256xf32>, i32 -> vector<8x256xf32>
    %8 = arith.addf %6, %7 : vector<8x256xf32>
    %c224_i32 = arith.constant 224 : i32
    %9 = tpu.dynamic_rotate %0 by %c224_i32 dim 1 : vector<8x256xf32>, i32 -> vector<8x256xf32>
    %10 = arith.addf %7, %9 : vector<8x256xf32>
    %11 = arith.addf %8, %10 : vector<8x256xf32>
    %12 = arith.subf %5, %11 : vector<8x256xf32>
    %13 = math.absf %12 : vector<8x256xf32>
    %c238_i32 = arith.constant 238 : i32
    %14 = tpu.dynamic_rotate %0 by %c238_i32 dim 1 : vector<8x256xf32>, i32 -> vector<8x256xf32>
    %15 = arith.addf %3, %14 : vector<8x256xf32>
    %16 = arith.addf %4, %15 : vector<8x256xf32>
    %c240_i32 = arith.constant 240 : i32
    %17 = tpu.dynamic_rotate %0 by %c240_i32 dim 1 : vector<8x256xf32>, i32 -> vector<8x256xf32>
    %18 = arith.addf %9, %17 : vector<8x256xf32>
    %19 = arith.addf %10, %18 : vector<8x256xf32>
    %20 = arith.subf %16, %19 : vector<8x256xf32>
    %21 = math.absf %20 : vector<8x256xf32>
    %22 = arith.maximumf %13, %21 : vector<8x256xf32>
    %23 = arith.addf %14, %6 : vector<8x256xf32>
    %24 = arith.addf %15, %23 : vector<8x256xf32>
    %25 = arith.addf %17, %0 : vector<8x256xf32>
    %26 = arith.addf %18, %25 : vector<8x256xf32>
    %27 = arith.subf %24, %26 : vector<8x256xf32>
    %28 = math.absf %27 : vector<8x256xf32>
    %29 = arith.maximumf %22, %28 : vector<8x256xf32>
    %30 = arith.addf %23, %8 : vector<8x256xf32>
    %31 = arith.addf %25, %2 : vector<8x256xf32>
    %32 = arith.subf %30, %31 : vector<8x256xf32>
    %33 = math.absf %32 : vector<8x256xf32>
    %34 = arith.maximumf %29, %33 : vector<8x256xf32>
    %35 = vector.shape_cast %34 : vector<8x256xf32> to vector<2x4x256xf32>
    %cst = arith.constant dense<0xFF800000> : vector<2x256xf32>
    %36 = vector.multi_reduction <maximumf>, %35, %cst [1] : vector<2x4x256xf32> to vector<2x256xf32>
    %cst_1 = arith.constant 1.250000e-01 : f32
    %37 = vector.broadcast %cst_1 : f32 to vector<2x256xf32>
    %38 = arith.mulf %36, %37 : vector<2x256xf32>
    %c0_2 = arith.constant 0 : index
    %c0_3 = arith.constant 0 : index
    %39 = vector.load %arg2[%c0_2, %c0_3] : memref<2x256xf32, #tpu.memory_space<vmem>>, vector<2x256xf32>
    tpu.vector_store %arg2[%c0_2, %c0_3], %38 {strides = array<i32>} : memref<2x256xf32, #tpu.memory_space<vmem>>, vector<2x256xf32>,
    return
  }
  func.func @transform_0(%arg0: i32) -> (i32, i32) {
    %c0_i32 = arith.constant 0 : i32
    %c0_i32_0 = arith.constant 0 : i32
    return %arg0, %c0_i32 : i32, i32
  }
  func.func @transform_1(%arg0: i32) -> (i32, i32) {
    %c0_i32 = arith.constant 0 : i32
    %c0_i32_0 = arith.constant 0 : i32
    return %arg0, %c0_i32 : i32, i32
  }
}

</mosaic_0001>

<bundles_post_ra>
// kernel: ehd_forward.1
= control target key start
LH: loop header
LB: loop body
LE: loop exit
PB: predicated region body
PF: predicated region fallthrough
CT: control target
= control target key end

     0   :  { %s207_s8 = smov 126   ;;  %s208_s9 = smov 127   ;;  %v14_v4 = vlaneseq  ;;  %vm125_vm7 = vcmask 1043456   ;;  %vm183_vm8 = vcmask 1041409   ;;  %vm185_vm9 = vcmask 1043459   ;;  %s260_s0 = inlined_call_operand.vmem [shape: f32[8,256], index: 0, kind: input, shape index: {}]   ;;  %s261_s1 = inlined_call_operand.vmem [shape: f32[2,256], index: 1, kind: output, shape index: {}]  }
   0x1   :  { %v228_v0 = vld [vmem:[%s260_s0] sm:$0xff]  ;;  %v235_v1 = vld [vmem:[%s260_s0 + $0x8] sm:$0xff]  ;;  %s209_s12 = smov 94   ;;  %s210_s13 = smov 95   ;;  %vm187_vm10 = vcmask 1045509   ;;  %vm189_vm11 = vcmask 1047559  }
   0x2   :  { %21 = vrot.lane.b32.xlu1 %v228_v0, %s207_s8  ;;  %10 = vrot.lane.b32.xlu0 %v228_v0, %s208_s9  ;;  %s211_s14 = smov 96   ;;  %s212_s0 = smov 110   ;;  %v15_v7 = vand.u32 127, %v14_v4 }
   0x3   :  { %s213_s15 = smov 112  }
   0x4   :  { %vm16_vm0 = vcmp.lt.s32.totalorder %v15_v7, 127  ;;  %vm25_vm1 = vcmp.lt.s32.totalorder %v15_v7, 126  ;;  %vm43_vm2 = vcmp.lt.s32.totalorder %v15_v7, 95  ;;  %vm52_vm3 = vcmp.lt.s32.totalorder %v15_v7, 96 }
   0x5   :  { %vm36_vm4 = vcmp.lt.s32.totalorder %v15_v7, 94  ;;  %vm67_vm5 = vcmp.lt.s32.totalorder %v15_v7, 110  ;;  %vm78_vm6 = vcmp.lt.s32.totalorder %v15_v7, 112 }
   0x6   :  { %23 = vrot.lane.b32.xlu1 %v235_v1, %s207_s8  ;;  %12 = vrot.lane.b32.xlu0 %v235_v1, %s208_s9 }
   0xa   :  { %34 = vrot.lane.b32.xlu1 %v235_v1, %s209_s12  ;;  %32 = vrot.lane.b32.xlu0 %v228_v0, %s209_s12 }
   0xe   :  { %41 = vrot.lane.b32.xlu1 %v235_v1, %s210_s13  ;;  %39 = vrot.lane.b32.xlu0 %v228_v0, %s210_s13 }
  0x12   :  { %50 = vrot.lane.b32.xlu1 %v235_v1, %s211_s14  ;;  %48 = vrot.lane.b32.xlu0 %v228_v0, %s211_s14 }
  0x16   :  { %65 = vrot.lane.b32.xlu1 %v235_v1, %s212_s0  ;;  %63 = vrot.lane.b32.xlu0 %v228_v0, %s212_s0 }
  0x1a   :  { %76 = vrot.lane.b32.xlu1 %v235_v1, %s213_s15  ;;  %74 = vrot.lane.b32.xlu0 %v228_v0, %s213_s15 }
  0x74   :  { %v22_v2 = vpop.permute.xlu1 %21  ;;  %v11_v3 = vpop.permute.xlu0 %10 }
  0x78   :  { %v24_v5 = vpop.permute.xlu1 %23  ;;  %v13_v6 = vpop.permute.xlu0 %12 }
  0x79   :  { %v17_v12 = vsel %vm16_vm0, %v11_v3, %v13_v6  ;;  %v18_v13 = vsel %vm16_vm0, %v13_v6, %v11_v3  ;;  %v26_v14 = vsel %vm25_vm1, %v22_v2, %v24_v5  ;;  %v27_v15 = vsel %vm25_vm1, %v24_v5, %v22_v2 }
  0x7a   :  { %v19_v22 = vadd.f32 %v17_v12, %v228_v0  ;;  %v20_v23 = vadd.f32 %v18_v13, %v235_v1  ;;  %v28_v26 = vadd.f32 %v26_v14, %v17_v12  ;;  %v29_v27 = vadd.f32 %v27_v15, %v18_v13 }
  0x7c   :  { %v35_v8 = vpop.permute.xlu1 %34  ;;  %v33_v9 = vpop.permute.xlu0 %32  ;;  %v30_v38 = vadd.f32 %v28_v26, %v19_v22  ;;  %v31_v39 = vadd.f32 %v29_v27, %v20_v23 }
  0x7d   :  { %v37_v28 = vsel %vm36_vm4, %v33_v9, %v35_v8  ;;  %v38_v29 = vsel %vm36_vm4, %v35_v8, %v33_v9 }
  0x80   :  { %v42_v10 = vpop.permute.xlu1 %41  ;;  %v40_v11 = vpop.permute.xlu0 %39 }
  0x81   :  { %v44_v18 = vsel %vm43_vm2, %v40_v11, %v42_v10  ;;  %v45_v19 = vsel %vm43_vm2, %v42_v10, %v40_v11 }
  0x82   :  { %v46_v30 = vadd.f32 %v44_v18, %v37_v28  ;;  %v47_v31 = vadd.f32 %v45_v19, %v38_v29 }
  0x84   :  { %v51_v16 = vpop.permute.xlu1 %50  ;;  %v49_v17 = vpop.permute.xlu0 %48 }
  0x85   :  { %v53_v20 = vsel %vm52_vm3, %v49_v17, %v51_v16  ;;  %v54_v21 = vsel %vm52_vm3, %v51_v16, %v49_v17 }
  0x86   :  { %v55_v24 = vadd.f32 %v53_v20, %v44_v18  ;;  %v56_v25 = vadd.f32 %v54_v21, %v45_v19 }
  0x88   :  { %v66_v32 = vpop.permute.xlu1 %65  ;;  %v64_v33 = vpop.permute.xlu0 %63  ;;  %v57_v36 = vadd.f32 %v55_v24, %v46_v30  ;;  %v58_v37 = vadd.f32 %v56_v25, %v47_v31 }
  0x89   :  { %v68_v34 = vsel %vm67_vm5, %v64_v33, %v66_v32  ;;  %v69_v35 = vsel %vm67_vm5, %v66_v32, %v64_v33 }
  0x8a   :  { %v70_v40 = vadd.f32 %v68_v34, %v26_v14  ;;  %v71_v41 = vadd.f32 %v69_v35, %v27_v15  ;;  %v91_v42 = vadd.f32 %v68_v34, %v37_v28  ;;  %v92_v43 = vadd.f32 %v69_v35, %v38_v29 }
  0x8b   :  { %v59_v46 = vsub.f32 %v30_v38, %v57_v36  ;;  %v60_v47 = vsub.f32 %v31_v39, %v58_v37  ;;  %v214_v39 = vmov 1983009808  }
  0x8c   :  { %v77_v44 = vpop.permute.xlu1 %76  ;;  %v75_v45 = vpop.permute.xlu0 %74  ;;  %v72_v54 = vadd.f32 %v70_v40, %v28_v26  ;;  %v73_v55 = vadd.f32 %v71_v41, %v29_v27  ;;  %v93_v56 = vadd.f32 %v91_v42, %v70_v40  ;;  %v94_v57 = vadd.f32 %v92_v43, %v71_v41 }
  0x8d   :  { %v79_v48 = vsel %vm78_vm6, %v75_v45, %v77_v44  ;;  %v80_v49 = vsel %vm78_vm6, %v77_v44, %v75_v45  ;;  %v105_v62 = vadd.f32 %v91_v42, %v46_v30  ;;  %v106_v63 = vadd.f32 %v92_v43, %v47_v31 }
  0x8e   :  { %v81_v50 = vadd.f32 %v79_v48, %v53_v20  ;;  %v82_v51 = vadd.f32 %v80_v49, %v54_v21  ;;  %v95_v52 = vadd.f32 %v79_v48, %v228_v0  ;;  %v96_v53 = vadd.f32 %v80_v49, %v235_v1 }
  0x8f   :  { %v61_v9 = vand.u32 2147483647, %v59_v46  ;;  %v62_v0 = vand.u32 2147483647, %v60_v47  ;;  %v164_v40 = vunpack.c.l.s4 %v214_v39 }
  0x90   :  { %v83_v58 = vadd.f32 %v81_v50, %v55_v24  ;;  %v84_v59 = vadd.f32 %v82_v51, %v56_v25  ;;  %v97_v60 = vadd.f32 %v95_v52, %v81_v50  ;;  %v98_v61 = vadd.f32 %v96_v53, %v82_v51 }
  0x91   :  { %v107_v2 = vadd.f32 %v95_v52, %v19_v22  ;;  %v108_v3 = vadd.f32 %v96_v53, %v20_v23  ;;  %v165_v49 = vunpack.c.0.s8 %v164_v40  ;;  %v167_v50 = vshrl.u32 %v14_v4, 7 }
  0x92   :  { %v85_v5 = vsub.f32 %v72_v54, %v83_v58  ;;  %v86_v6 = vsub.f32 %v73_v55, %v84_v59  ;;  %v99_v7 = vsub.f32 %v93_v56, %v97_v60  ;;  %v100_v8 = vsub.f32 %v94_v57, %v98_v61 }
  0x93   :  { %v109_v11 = vsub.f32 %v105_v62, %v107_v2  ;;  %v110_v12 = vsub.f32 %v106_v63, %v108_v3  ;;  %v168_v59 = vsub.s32 %v165_v49, %v167_v50 }
  0x94   :  { %v87_v10 = vand.u32 2147483647, %v85_v5  ;;  %v88_v1 = vand.u32 2147483647, %v86_v6  ;;  %v101_v15 = vand.u32 2147483647, %v99_v7 }
  0x95   :  { %v102_v16 = vand.u32 2147483647, %v100_v8  ;;  %v111_v19 = vand.u32 2147483647, %v109_v11  ;;  %v112_v20 = vand.u32 2147483647, %v110_v12 }
  0x96   :  { %v89_v13 = vmax.f32.f32 %v61_v9, %v87_v10  ;;  %v90_v14 = vmax.f32.f32 %v62_v0, %v88_v1 }
  0x98   :  { %v103_v17 = vmax.f32.f32 %v89_v13, %v101_v15  ;;  %v104_v18 = vmax.f32.f32 %v90_v14, %v102_v16 }
  0x9a   :  { %v113_v21 = vmax.f32.f32 %v103_v17, %v111_v19  ;;  %v114_v22 = vmax.f32.f32 %v104_v18, %v112_v20 }
  0x9c   :  { %v117_v23 = vcombine.low %v113_v21, %v114_v22  ;;  %v118_v24 = vcombine.high %v113_v21, %v114_v22  ;;  %v197_v25 = vcombine.low %v114_v22, %v114_v22  ;;  %v198_v26 = vcombine.high %v114_v22, %v114_v22 }
  0x9e   :  { %v126_v27 = vsel %vm125_vm7, %v117_v23, -inf  ;;  %v133_v28 = vsel %vm125_vm7, %v197_v25, -inf  ;;  %v140_v29 = vsel %vm125_vm7, %v118_v24, -inf  ;;  %v147_v30 = vsel %vm125_vm7, %v198_v26, -inf }
  0x9f   :  { %v127_v31 = vrot.slane %v126_v27, 4  ;;  %v134_v32 = vrot.slane %v133_v28, 4  ;;  %v141_v33 = vrot.slane %v140_v29, 4  ;;  %v148_v34 = vrot.slane %v147_v30, 4 }
  0xa1   :  { %v128_v35 = vmax.f32 %v126_v27, %v127_v31  ;;  %v135_v36 = vmax.f32 %v133_v28, %v134_v32  ;;  %v142_v37 = vmax.f32 %v140_v29, %v141_v33  ;;  %v149_v38 = vmax.f32 %v147_v30, %v148_v34 }
  0xa3   :  { %v129_v41 = vrot.slane %v128_v35, 2  ;;  %v136_v42 = vrot.slane %v135_v36, 2  ;;  %v143_v43 = vrot.slane %v142_v37, 2  ;;  %v150_v44 = vrot.slane %v149_v38, 2 }
  0xa5   :  { %v130_v45 = vmax.f32 %v128_v35, %v129_v41  ;;  %v137_v46 = vmax.f32 %v135_v36, %v136_v42  ;;  %v144_v47 = vmax.f32 %v142_v37, %v143_v43  ;;  %v151_v48 = vmax.f32 %v149_v38, %v150_v44 }
  0xa7   :  { %v131_v51 = vrot.slane %v130_v45, 1  ;;  %v138_v52 = vrot.slane %v137_v46, 1  ;;  %v145_v53 = vrot.slane %v144_v47, 1  ;;  %v152_v54 = vrot.slane %v151_v48, 1 }
  0xa9   :  { %v132_v55 = vmax.f32 %v130_v45, %v131_v51  ;;  %v139_v56 = vmax.f32 %v137_v46, %v138_v52  ;;  %v146_v57 = vmax.f32 %v144_v47, %v145_v53  ;;  %v153_v58 = vmax.f32 %v151_v48, %v152_v54 }
  0xab   :  { %v154_v60 = vmul.f32 0.125, %v132_v55  ;;  %v155_v61 = vmul.f32 0.125, %v139_v56  ;;  %v156_v62 = vmul.f32 0.125, %v146_v57  ;;  %v157_v63 = vmul.f32 0.125, %v153_v58 }
  0xad   :  { %v162_v2 = vcombine.low %v154_v60, %v155_v61  ;;  %v170_v3 = vcombine.low %v156_v62, %v157_v63 }
  0xaf   :  { %v177_v5 = vrot.slane %v170_v3, %v168_v59  ;;  %v169_v6 = vrot.slane %v162_v2, %v168_v59 }
  0xb1   :  { %v182_v4 = vrot.slane %v177_v5, 7 }
  0xb3   :  { %v184_v7 = vsel %vm183_vm8, %v182_v4, %v169_v6 }
  0xb4   :  { %v186_v8 = vsel %vm185_vm9, %v182_v4, %v184_v7 }
  0xb5   :  { %v188_v9 = vsel %vm187_vm10, %v182_v4, %v186_v8 }
  0xb6   :  { %v190_v0 = vsel %vm189_vm11, %v182_v4, %v188_v9 }
  0xb7   :  { %192 = vst [vmem:[%s261_s1] sm:$0xf] %v190_v0 }

</bundles_post_ra>
